<compile_context>
chip_gen: v7x
topology: tpu7x:2x2x1
jax: 0.10.0
libtpu: 0.0.40
codegen_flags: <defaults>
</compile_context>

<pallas_src>
import functools
import math

import numpy as np
import jax
import jax.numpy as jnp
from jax.experimental import pallas as pl
from jax.experimental.pallas import tpu as pltpu


def _round_up(x, m):
    return (x + m - 1) // m * m


# ---------------------------------------------------------------------------
# Pallas kernel: fused (X | 1) @ [W ; b]  + activation   (bias folded into W)
# ---------------------------------------------------------------------------
def _matmul_act_kernel(x_ref, w_ref, o_ref, *, act):
    acc = jnp.dot(x_ref[...], w_ref[...], preferred_element_type=jnp.float32)
    if act == "relu":
        acc = jnp.maximum(acc, 0.0)
    elif act == "sigmoid":
        acc = jax.nn.sigmoid(acc)
    o_ref[...] = acc.astype(o_ref.dtype)


def pack_weight_bias(w, b):
    """Pack (K, N) weight + (N,) bias into a bf16 (K_pad, N_pad) matrix.

    Bias goes in the LAST row (matched by a ones-column appended to X).
    K_pad, N_pad are multiples of 128 -> lane-dense, aligned MXU tiles.
    One-time cost; reused every call.
    """
    K, N = w.shape
    K_pad = _round_up(K + 1, 128)
    N_pad = _round_up(N, 128)
    wp = jnp.zeros((K_pad, N_pad), jnp.float32)
    wp = wp.at[:K, :N].set(w.astype(jnp.float32))
    wp = wp.at[K_pad - 1, :N].set(b.astype(jnp.float32))
    return wp.astype(jnp.bfloat16)


def matmul_act(x, wp, n_out, act, out_dtype=jnp.float32, tm_max=512):
    """out[:M, :n_out] = act(x @ W + b), W/b pre-packed by pack_weight_bias."""
    M, K = x.shape
    K_pad, N_pad = wp.shape
    assert K_pad >= K + 1 and n_out <= N_pad

    # M tiling: multiple of 16 (bf16 sublane pack); one tile at demo shapes,
    # pipelined + megacore-parallel tiles for large M.
    tm = min(tm_max, _round_up(M, 16))
    M_pad = _round_up(M, tm)

    # Augment X: bf16 cast, zero-pad K, ones column aligned with bias row.
    xb = x.astype(jnp.bfloat16)
    xb = jnp.concatenate(
        [xb,
         jnp.zeros((M, K_pad - K - 1), jnp.bfloat16),
         jnp.ones((M, 1), jnp.bfloat16)],
        axis=1)
    xb = jnp.pad(xb, ((0, M_pad - M), (0, 0)))

    out = pl.pallas_call(
        functools.partial(_matmul_act_kernel, act=act),
        out_shape=jax.ShapeDtypeStruct((M_pad, N_pad), out_dtype),
        grid=(M_pad // tm,),
        in_specs=[
            pl.BlockSpec((tm, K_pad), lambda i: (i, 0)),
            pl.BlockSpec((K_pad, N_pad), lambda i: (0, 0)),
        ],
        out_specs=pl.BlockSpec((tm, N_pad), lambda i: (i, 0)),
        compiler_params=pltpu.CompilerParams(
            dimension_semantics=("parallel",),
            vmem_limit_bytes=32 * 1024 * 1024,
        ),
    )(xb, wp)
    return out[:M, :n_out]


# ---------------------------------------------------------------------------
# ConvTranspose2d(k=5, stride=2, padding=2, output_padding=1) via sub-pixel
# (pixel-shuffle) decomposition: 9-tap im2col on the original resolution.
# ---------------------------------------------------------------------------
# Per output parity p and tap offset d in {-1,0,+1}: which kernel index it uses.
_K_EVEN = (4, 2, 0)       # d = -1, 0, +1
_K_ODD = (None, 3, 1)     # d = -1 (no tap), 0, +1


def pack_convT_weight(w, b):
    """w: (C_in, C_out, 5, 5) (PyTorch ConvTranspose2d layout), b: (C_out,).

    Returns bf16 packed weight of logical shape (9*C_in, 4*C_out) (+ bias row,
    padded to 128 multiples). Row order = (tap_dy, tap_dx, ci); column order =
    (py, px, co) — matching the im2col / pixel-shuffle below.
    """
    C_in, C_out = w.shape[0], w.shape[1]
    blocks = []
    for py in (0, 1):
        kys = _K_EVEN if py == 0 else _K_ODD
        for px in (0, 1):
            kxs = _K_EVEN if px == 0 else _K_ODD
            rows = []
            for ky in kys:
                for kx in kxs:
                    if ky is None or kx is None:
                        rows.append(jnp.zeros((C_in, C_out), w.dtype))
                    else:
                        rows.append(w[:, :, ky, kx])
            blocks.append(jnp.concatenate(rows, axis=0))      # (9*C_in, C_out)
    w_sub = jnp.concatenate(blocks, axis=1)                   # (9*C_in, 4*C_out)
    b_sub = jnp.tile(b, 4)
    return pack_weight_bias(w_sub, b_sub)


def conv_transpose2d_subpixel(x_nhwc, wp, c_out, act, out_dtype):
    """x_nhwc: (B, H, W, C_in). Returns NHWC (B, 2H, 2W, c_out)."""
    B, H, W, C_in = x_nhwc.shape

    # 9-tap im2col on the ORIGINAL input (no zero-dilation).
    xp = jnp.pad(x_nhwc, ((0, 0), (1, 1), (1, 1), (0, 0)))
    taps = []
    for dy in range(3):
        for dx in range(3):
            taps.append(xp[:, dy:dy + H, dx:dx + W, :])
    patches = jnp.stack(taps, axis=3)                          # (B,H,W,9,C_in)
    p = patches.reshape(B * H * W, 9 * C_in)

    out = matmul_act(p, wp, n_out=4 * c_out, act=act, out_dtype=out_dtype)

    # Pixel shuffle: (py, px, co) columns -> interleave into (2H, 2W).
    out = out.reshape(B, H, W, 2, 2, c_out)
    out = out.transpose(0, 1, 3, 2, 4, 5).reshape(B, 2 * H, 2 * W, c_out)
    return out


# ---------------------------------------------------------------------------
# RN module (forward) in JAX + Pallas
# ---------------------------------------------------------------------------
def init_rn_params(key, input_dims, output_dim):
    H, W, C = input_dims
    ch, cw = H // 4, W // 4
    fc_out = 6 * ch * cw
    k0, k1, k2, k3, k4, k5 = jax.random.split(key, 6)

    def u(k, shape, fan_in):
        bound = 1.0 / math.sqrt(fan_in)
        return jax.random.uniform(k, shape, jnp.float32, -bound, bound)

    return {
        "fc1_w": u(k0, (fc_out, output_dim), output_dim),      # (out, in)
        "fc1_b": u(k1, (fc_out,), output_dim),
        "c1_w": u(k2, (6, 16, 5, 5), 6 * 25),                  # (in, out, kH, kW)
        "c1_b": u(k3, (16,), 6 * 25),
        "c2_w": u(k4, (16, C, 5, 5), 16 * 25),
        "c2_b": u(k5, (C,), 16 * 25),
    }


def rn_forward(params, x, input_dims):
    H, W, C = input_dims
    ch, cw = H // 4, W // 4
    B = x.shape[0]

    # Weight packing is static w.r.t. params; under jit with captured params it
    # is constant-folded (true one-time pad).
    w1p = pack_weight_bias(params["fc1_w"].T, params["fc1_b"])
    w2p = pack_convT_weight(params["c1_w"], params["c1_b"])
    w3p = pack_convT_weight(params["c2_w"], params["c2_b"])

    # fc1 + relu (bf16 intermediate)
    h = matmul_act(x, w1p, n_out=6 * ch * cw, act="relu", out_dtype=jnp.bfloat16)
    # Torch reshape semantics: (B, 6, com_width, com_height) NCHW; go NHWC.
    h = h.reshape(B, 6, cw, ch).transpose(0, 2, 3, 1)          # (B, cw, ch, 6)

    # convT1 + relu (bf16 intermediate)
    h = conv_transpose2d_subpixel(h, w2p, c_out=16, act="relu",
                                  out_dtype=jnp.bfloat16)
    # convT2 + sigmoid (f32 output)
    h = conv_transpose2d_subpixel(h, w3p, c_out=C, act="sigmoid",
                                  out_dtype=jnp.float32)

    return h.transpose(0, 3, 1, 2)                             # NCHW


# ---------------------------------------------------------------------------
# Pure-JAX f32 reference (sanity check of the Pallas path)
# ---------------------------------------------------------------------------
def rn_reference(params, x, input_dims):
    H, W, _ = input_dims
    ch, cw = H // 4, W // 4
    B = x.shape[0]
    h = jnp.maximum(x @ params["fc1_w"].T + params["fc1_b"], 0.0)
    h = h.reshape(B, 6, cw, ch)

    def convT(h, w, b, act):
        w_conv = jnp.flip(w, axis=(2, 3)).transpose(1, 0, 2, 3)
        out = jax.lax.conv_general_dilated(
            h, w_conv, window_strides=(1, 1),
            padding=[(2, 3), (2, 3)], lhs_dilation=(2, 2),
            dimension_numbers=("NCHW", "OIHW", "NCHW"))
        return act(out + b.reshape(1, -1, 1, 1))

    h = convT(h, params["c1_w"], params["c1_b"], lambda v: jnp.maximum(v, 0.0))
    h = convT(h, params["c2_w"], params["c2_b"], jax.nn.sigmoid)
    return h


if __name__ == "__main__":
    input_dims = (16, 16, 4)   # (H, W, C)
    output_dim = 32
    batch = 2

    key = jax.random.PRNGKey(0)
    pkey, xkey = jax.random.split(key)
    params = init_rn_params(pkey, input_dims, output_dim)
    x = jax.random.normal(xkey, (batch, output_dim), jnp.float32)

    fwd = jax.jit(lambda xx: rn_forward(params, xx, input_dims))
    out = jax.block_until_ready(fwd(x))
    assert out.shape == (batch, input_dims[2], input_dims[0], input_dims[1]), out.shape

    ref = jax.block_until_ready(rn_reference(params, x, input_dims))
    # bf16 MXU inputs + bf16 inter-stage activations vs a full-f32 reference:
    # sigmoid-bounded outputs agree to well under 1e-2.
    np.testing.assert_allclose(np.asarray(out), np.asarray(ref), atol=1e-2, rtol=1e-2)

    print("KERNEL_OK")
</pallas_src>

<mosaic_0001>
module attributes {stable_mosaic.version = 11 : i64} {
  func.func @_matmul_act_kernel(%arg0: i32, %arg1: memref<16x128xbf16, #tpu.memory_space<vmem>>, %arg2: memref<128x128xbf16, #tpu.memory_space<vmem>>, %arg3: memref<16x128xbf16, #tpu.memory_space<vmem>>) attributes {dimension_semantics = [#tpu.dimension_semantics<parallel>], iteration_bounds = array<i64: 1>, scalar_prefetch = 0 : i64, scratch_operands = 0 : i64, tpu.core_type = #tpu.core_type<tc>, window_params = [{transform_indices = @transform_0, window_bounds = array<i64: 16, 128>}, {pipeline_mode = #tpu.pipeline_mode<synchronous>, transform_indices = @transform_1, window_bounds = array<i64: 128, 128>}, {transform_indices = @transform_2, window_bounds = array<i64: 16, 128>}]} {
    %c0 = arith.constant 0 : index
    %c0_0 = arith.constant 0 : index
    %0 = vector.load %arg1[%c0, %c0_0] : memref<16x128xbf16, #tpu.memory_space<vmem>>, vector<16x128xbf16>
    %c0_1 = arith.constant 0 : index
    %c0_2 = arith.constant 0 : index
    %1 = vector.load %arg2[%c0_1, %c0_2] : memref<128x128xbf16, #tpu.memory_space<vmem>>, vector<128x128xbf16>
    %cst = arith.constant dense<0.000000e+00> : vector<16x128xf32>
    %2 = tpu.matmul %0, %1, %cst {dimension_numbers = #tpu.dot_dimension_numbers<[1], [0], [0], [1], [0, 0, 1, 1], [], []>} : vector<16x128xbf16>, vector<128x128xbf16>, vector<16x128xf32> -> vector<16x128xf32>
    %cst_3 = arith.constant 0.000000e+00 : f32
    %3 = vector.broadcast %cst_3 : f32 to vector<16x128xf32>
    %4 = arith.maximumf %2, %3 : vector<16x128xf32>
    %5 = arith.truncf %4 : vector<16x128xf32> to vector<16x128xbf16>
    %c0_4 = arith.constant 0 : index
    %c0_5 = arith.constant 0 : index
    %6 = vector.load %arg3[%c0_4, %c0_5] : memref<16x128xbf16, #tpu.memory_space<vmem>>, vector<16x128xbf16>
    tpu.vector_store %arg3[%c0_4, %c0_5], %5 {strides = array<i32>} : memref<16x128xbf16, #tpu.memory_space<vmem>>, vector<16x128xbf16>,
    return
  }
  func.func @transform_0(%arg0: i32) -> (i32, i32) {
    %c0_i32 = arith.constant 0 : i32
    %c0_i32_0 = arith.constant 0 : i32
    return %arg0, %c0_i32 : i32, i32
  }
  func.func @transform_1(%arg0: i32) -> (i32, i32) {
    %c0_i32 = arith.constant 0 : i32
    %c0_i32_0 = arith.constant 0 : i32
    %c0_i32_1 = arith.constant 0 : i32
    return %c0_i32, %c0_i32_0 : i32, i32
  }
  func.func @transform_2(%arg0: i32) -> (i32, i32) {
    %c0_i32 = arith.constant 0 : i32
    %c0_i32_0 = arith.constant 0 : i32
    return %arg0, %c0_i32 : i32, i32
  }
}

module attributes {stable_mosaic.version = 11 : i64} {
  func.func @_matmul_act_kernel(%arg0: i32, %arg1: memref<32x128xbf16, #tpu.memory_space<vmem>>, %arg2: memref<128x128xbf16, #tpu.memory_space<vmem>>, %arg3: memref<32x128xbf16, #tpu.memory_space<vmem>>) attributes {dimension_semantics = [#tpu.dimension_semantics<parallel>], iteration_bounds = array<i64: 1>, scalar_prefetch = 0 : i64, scratch_operands = 0 : i64, tpu.core_type = #tpu.core_type<tc>, window_params = [{transform_indices = @transform_0, window_bounds = array<i64: 32, 128>}, {pipeline_mode = #tpu.pipeline_mode<synchronous>, transform_indices = @transform_1, window_bounds = array<i64: 128, 128>}, {transform_indices = @transform_2, window_bounds = array<i64: 32, 128>}]} {
    %c0 = arith.constant 0 : index
    %c0_0 = arith.constant 0 : index
    %0 = vector.load %arg1[%c0, %c0_0] : memref<32x128xbf16, #tpu.memory_space<vmem>>, vector<32x128xbf16>
    %c0_1 = arith.constant 0 : index
    %c0_2 = arith.constant 0 : index
    %1 = vector.load %arg2[%c0_1, %c0_2] : memref<128x128xbf16, #tpu.memory_space<vmem>>, vector<128x128xbf16>
    %cst = arith.constant dense<0.000000e+00> : vector<32x128xf32>
    %2 = tpu.matmul %0, %1, %cst {dimension_numbers = #tpu.dot_dimension_numbers<[1], [0], [0], [1], [0, 0, 1, 1], [], []>} : vector<32x128xbf16>, vector<128x128xbf16>, vector<32x128xf32> -> vector<32x128xf32>
    %cst_3 = arith.constant 0.000000e+00 : f32
    %3 = vector.broadcast %cst_3 : f32 to vector<32x128xf32>
    %4 = arith.maximumf %2, %3 : vector<32x128xf32>
    %5 = arith.truncf %4 : vector<32x128xf32> to vector<32x128xbf16>
    %c0_4 = arith.constant 0 : index
    %c0_5 = arith.constant 0 : index
    %6 = vector.load %arg3[%c0_4, %c0_5] : memref<32x128xbf16, #tpu.memory_space<vmem>>, vector<32x128xbf16>
    tpu.vector_store %arg3[%c0_4, %c0_5], %5 {strides = array<i32>} : memref<32x128xbf16, #tpu.memory_space<vmem>>, vector<32x128xbf16>,
    return
  }
  func.func @transform_0(%arg0: i32) -> (i32, i32) {
    %c0_i32 = arith.constant 0 : i32
    %c0_i32_0 = arith.constant 0 : i32
    return %arg0, %c0_i32 : i32, i32
  }
  func.func @transform_1(%arg0: i32) -> (i32, i32) {
    %c0_i32 = arith.constant 0 : i32
    %c0_i32_0 = arith.constant 0 : i32
    %c0_i32_1 = arith.constant 0 : i32
    return %c0_i32, %c0_i32_0 : i32, i32
  }
  func.func @transform_2(%arg0: i32) -> (i32, i32) {
    %c0_i32 = arith.constant 0 : i32
    %c0_i32_0 = arith.constant 0 : i32
    return %arg0, %c0_i32 : i32, i32
  }
}

module attributes {stable_mosaic.version = 11 : i64} {
  func.func @_matmul_act_kernel(%arg0: i32, %arg1: memref<128x256xbf16, #tpu.memory_space<vmem>>, %arg2: memref<256x128xbf16, #tpu.memory_space<vmem>>, %arg3: memref<128x128xf32, #tpu.memory_space<vmem>>) attributes {dimension_semantics = [#tpu.dimension_semantics<parallel>], iteration_bounds = array<i64: 1>, scalar_prefetch = 0 : i64, scratch_operands = 0 : i64, tpu.core_type = #tpu.core_type<tc>, window_params = [{transform_indices = @transform_0, window_bounds = array<i64: 128, 256>}, {pipeline_mode = #tpu.pipeline_mode<synchronous>, transform_indices = @transform_1, window_bounds = array<i64: 256, 128>}, {transform_indices = @transform_2, window_bounds = array<i64: 128, 128>}]} {
    %c0 = arith.constant 0 : index
    %c0_0 = arith.constant 0 : index
    %0 = vector.load %arg1[%c0, %c0_0] : memref<128x256xbf16, #tpu.memory_space<vmem>>, vector<128x256xbf16>
    %c0_1 = arith.constant 0 : index
    %c0_2 = arith.constant 0 : index
    %1 = vector.load %arg2[%c0_1, %c0_2] : memref<256x128xbf16, #tpu.memory_space<vmem>>, vector<256x128xbf16>
    %cst = arith.constant dense<0.000000e+00> : vector<128x128xf32>
    %2 = tpu.matmul %0, %1, %cst {dimension_numbers = #tpu.dot_dimension_numbers<[1], [0], [0], [1], [0, 0, 1, 1], [], []>} : vector<128x256xbf16>, vector<256x128xbf16>, vector<128x128xf32> -> vector<128x128xf32>
    %3 = arith.negf %2 : vector<128x128xf32>
    %4 = math.exp %3 : vector<128x128xf32>
    %cst_3 = arith.constant 1.000000e+00 : f32
    %5 = vector.broadcast %cst_3 : f32 to vector<128x128xf32>
    %6 = arith.addf %5, %4 : vector<128x128xf32>
    %7 = arith.divf %5, %6 : vector<128x128xf32>
    %c0_4 = arith.constant 0 : index
    %c0_5 = arith.constant 0 : index
    %8 = vector.load %arg3[%c0_4, %c0_5] : memref<128x128xf32, #tpu.memory_space<vmem>>, vector<128x128xf32>
    tpu.vector_store %arg3[%c0_4, %c0_5], %7 {strides = array<i32>} : memref<128x128xf32, #tpu.memory_space<vmem>>, vector<128x128xf32>,
    return
  }
  func.func @transform_0(%arg0: i32) -> (i32, i32) {
    %c0_i32 = arith.constant 0 : i32
    %c0_i32_0 = arith.constant 0 : i32
    return %arg0, %c0_i32 : i32, i32
  }
  func.func @transform_1(%arg0: i32) -> (i32, i32) {
    %c0_i32 = arith.constant 0 : i32
    %c0_i32_0 = arith.constant 0 : i32
    %c0_i32_1 = arith.constant 0 : i32
    return %c0_i32, %c0_i32_0 : i32, i32
  }
  func.func @transform_2(%arg0: i32) -> (i32, i32) {
    %c0_i32 = arith.constant 0 : i32
    %c0_i32_0 = arith.constant 0 : i32
    return %arg0, %c0_i32 : i32, i32
  }
}

</mosaic_0001>

<bundles_post_ra>
// kernel: _lambda_.3
= control target key start
LH: loop header
LB: loop body
LE: loop exit
PB: predicated region body
PF: predicated region fallthrough
CT: control target
= control target key end

     0   :  { %v199_v0 = vmov 0.0   ;;  %vm200_vm0 = vmmov 0   ;;  %s246_s1 = inlined_call_operand.vmem [shape: bf16[128,128], index: 1, kind: input, shape index: {}]   ;;  %s247_s0 = inlined_call_operand.vmem [shape: bf16[16,128], index: 0, kind: input, shape index: {}]   ;;  %s248_s2 = inlined_call_operand.vmem [shape: bf16[16,128], index: 2, kind: output, shape index: {}]  }
   0x1   :  { %168 = vmatprep.subr.bf16.mxu0 %v199_v0  ;;  %v190_v1 = vld [vmem:[%s246_s1] sm:$0xff]   ;;  %184 = vmatprep.mubr.msk.bf16.mxu0 %vm200_vm0, %v199_v0  ;;  %v191_v2 = vld [vmem:[%s246_s1 + $0x8] sm:$0xff]   ;;  %v192_v3 = vld [vmem:[%s246_s1 + $0x10] sm:$0xff]  }
   0x2   :  { %169 = vmatpush3.bf16.msra.mxu0 %v190_v1  ;;  %v193_v4 = vld [vmem:[%s246_s1 + $0x18] sm:$0xff]   ;;  %v194_v5 = vld [vmem:[%s246_s1 + $0x20] sm:$0xff]   ;;  %v195_v6 = vld [vmem:[%s246_s1 + $0x28] sm:$0xff]  }
   0x3   :  { %170 = vmatprep.subr.bf16.mxu0 %v199_v0  ;;  %v196_v7 = vld [vmem:[%s246_s1 + $0x30] sm:$0xff]   ;;  %v197_v8 = vld [vmem:[%s246_s1 + $0x38] sm:$0xff]   ;;  %v198_v9 = vld [vmem:[%s247_s0] sm:$0xff]  }
   0x6   :  { %171 = vmatpush3.bf16.msra.mxu0 %v191_v2 }
   0x7   :  { %172 = vmatprep.subr.bf16.mxu0 %v199_v0 }
   0xa   :  { %173 = vmatpush3.bf16.msra.mxu0 %v192_v3 }
   0xb   :  { %174 = vmatprep.subr.bf16.mxu0 %v199_v0 }
   0xe   :  { %175 = vmatpush3.bf16.msra.mxu0 %v193_v4 }
   0xf   :  { %176 = vmatprep.subr.bf16.mxu0 %v199_v0 }
  0x12   :  { %177 = vmatpush3.bf16.msra.mxu0 %v194_v5 }
  0x13   :  { %178 = vmatprep.subr.bf16.mxu0 %v199_v0 }
  0x16   :  { %179 = vmatpush3.bf16.msra.mxu0 %v195_v6 }
  0x17   :  { %180 = vmatprep.subr.bf16.mxu0 %v199_v0 }
  0x1a   :  { %181 = vmatpush3.bf16.msra.mxu0 %v196_v7 }
  0x1b   :  { %182 = vmatprep.subr.bf16.mxu0 %v199_v0 }
  0x1e   :  { %183 = vmatpush3.bf16.msra.mxu0 %v197_v8 }
  0x21   :  { %185 = vmatmul.mubr.bf16.vlgmr.msra.gmra.mrb[0].mxu0 %v198_v9 }
  0xf4   :  { %v118_v10 = vpop.f32.mrb[0].mxu0 }
  0xf5   :  { %v186_v11 = vpop.f32.mrb[1].mxu0  ;;  %v125_v13 = vmax.f32 %v118_v10, 0.0 }
  0xf6   :  { %v121_v12 = vpop.f32.mrb[2].mxu0 }
  0xf7   :  { %v126_v14 = vmax.f32 %v121_v12, 0.0  ;;  %v187_v15 = vpop.f32.mrb[3].mxu0 }
  0xf9   :  { %v157_v16 = vpack.c.bf16 %v126_v14, %v125_v13 }
  0xfb   :  { %158 = vst [vmem:[%s248_s2] sm:$0xff] %v157_v16  }

// kernel: tile.10
= control target key start
LH: loop header
LB: loop body
LE: loop exit
PB: predicated region body
PF: predicated region fallthrough
CT: control target
= control target key end

     0   :  { %v12_v2 = vmov 0.0   ;;  %s29_s0 = inlined_call_operand.vmem [shape: bf16[16], index: 0, kind: input, shape index: {}]   ;;  %s30_s1 = inlined_call_operand.vmem [shape: bf16[4,16], index: 1, kind: output, shape index: {}]  }
   0x1   :  { %v4_v0 = vld [vmem:[%s29_s0] ss:$0 sm:$0xff] }
   0x2   :  { %v5_v1 = vunpack.i.l.bf16 %v4_v0 }
   0x4   :  { %v9_v3 = vpack.c.bf16 %v12_v2, %v5_v1 }
   0x6   :  { %10 = vst [vmem:[%s30_s1] sm:$0x3] %v9_v3 }

// kernel: _lambda_.4
= control target key start
LH: loop header
LB: loop body
LE: loop exit
PB: predicated region body
PF: predicated region fallthrough
CT: control target
= control target key end

     0   :  { %s289_s1 = inlined_call_operand.vmem [shape: bf16[128,128], index: 1, kind: input, shape index: {}]   ;;  %s290_s0 = inlined_call_operand.vmem [shape: bf16[32,128], index: 0, kind: input, shape index: {}]   ;;  %s291_s2 = inlined_call_operand.vmem [shape: bf16[32,128], index: 2, kind: output, shape index: {}]  }
   0x1   :  { %v228_v0 = vld [vmem:[%s289_s1] sm:$0xff]   ;;  %v229_v1 = vld [vmem:[%s289_s1 + $0x8] sm:$0xff]   ;;  %v230_v2 = vld [vmem:[%s289_s1 + $0x10] sm:$0xff]  }
   0x2   :  { %208 = vmatprep.subr.bf16.mxu0 %v228_v0  ;;  %v231_v3 = vld [vmem:[%s289_s1 + $0x18] sm:$0xff]   ;;  %v236_v4 = vld [vmem:[%s290_s0] sm:$0xff]   ;;  %v233_v6 = vld [vmem:[%s289_s1 + $0x28] sm:$0xff]  }
   0x3   :  { %209 = vmatpush3.bf16.msra.mxu0 %v228_v0  ;;  %224 = vmatprep.mubr.bf16.mxu0 %v236_v4  ;;  %v232_v5 = vld [vmem:[%s289_s1 + $0x20] sm:$0xff]   ;;  %v234_v7 = vld [vmem:[%s289_s1 + $0x30] sm:$0xff]   ;;  %v235_v8 = vld [vmem:[%s289_s1 + $0x38] sm:$0xff]  }
   0x4   :  { %210 = vmatprep.subr.bf16.mxu0 %v229_v1  ;;  %v237_v9 = vld [vmem:[%s290_s0 + $0x8] sm:$0xff]  }
   0x7   :  { %211 = vmatpush3.bf16.msra.mxu0 %v229_v1 }
   0x8   :  { %212 = vmatprep.subr.bf16.mxu0 %v230_v2 }
   0xb   :  { %213 = vmatpush3.bf16.msra.mxu0 %v230_v2 }
   0xc   :  { %214 = vmatprep.subr.bf16.mxu0 %v231_v3 }
   0xf   :  { %215 = vmatpush3.bf16.msra.mxu0 %v231_v3 }
  0x10   :  { %216 = vmatprep.subr.bf16.mxu0 %v232_v5 }
  0x13   :  { %217 = vmatpush3.bf16.msra.mxu0 %v232_v5 }
  0x14   :  { %218 = vmatprep.subr.bf16.mxu0 %v233_v6 }
  0x17   :  { %219 = vmatpush3.bf16.msra.mxu0 %v233_v6 }
  0x18   :  { %220 = vmatprep.subr.bf16.mxu0 %v234_v7 }
  0x1b   :  { %221 = vmatpush3.bf16.msra.mxu0 %v234_v7 }
  0x1c   :  { %222 = vmatprep.subr.bf16.mxu0 %v235_v8 }
  0x1f   :  { %223 = vmatpush3.bf16.msra.mxu0 %v235_v8 }
  0x22   :  { %225 = vmatmul.mubr.bf16.vlgmr.msra.gmra.mrb[0].mxu0 %v237_v9 }
  0xf5   :  { %v226_v10 = vpop.f32.mrb[0].mxu0 }
  0xf6   :  { %v126_v11 = vpop.f32.mrb[1].mxu0  ;;  %v143_v13 = vmax.f32 %v226_v10, 0.0 }
  0xf7   :  { %v227_v12 = vpop.f32.mrb[2].mxu0  ;;  %v141_v16 = vmax.f32 %v126_v11, 0.0 }
  0xf8   :  { %v144_v14 = vmax.f32 %v227_v12, 0.0  ;;  %v129_v15 = vpop.f32.mrb[3].mxu0 }
  0xf9   :  { %v142_v17 = vmax.f32 %v129_v15, 0.0 }
  0xfa   :  { %v195_v18 = vpack.c.bf16 %v144_v14, %v143_v13 }
  0xfb   :  { %v190_v19 = vpack.c.bf16 %v142_v17, %v141_v16 }
  0xfc   :  { %197 = vst [vmem:[%s291_s2 + $0x8] sm:$0xff] %v195_v18  }
  0xfd   :  { %191 = vst [vmem:[%s291_s2] sm:$0xff] %v190_v19  }

// kernel: tile.14
= control target key start
LH: loop header
LB: loop body
LE: loop exit
PB: predicated region body
PF: predicated region fallthrough
CT: control target
= control target key end

     0   :  { %v12_v2 = vmov 0.0   ;;  %s29_s0 = inlined_call_operand.vmem [shape: bf16[4], index: 0, kind: input, shape index: {}]   ;;  %s30_s1 = inlined_call_operand.vmem [shape: bf16[4,4], index: 1, kind: output, shape index: {}]  }
   0x1   :  { %v4_v0 = vld [vmem:[%s29_s0] ss:$0 sm:$0xff] }
   0x2   :  { %v5_v1 = vunpack.i.l.bf16 %v4_v0 }
   0x4   :  { %v9_v3 = vpack.c.bf16 %v12_v2, %v5_v1 }
   0x6   :  { %10 = vst [vmem:[%s30_s1] sm:$0x3] %v9_v3 }

// kernel: _lambda_.5
= control target key start
LH: loop header
LB: loop body
LE: loop exit
PB: predicated region body
PF: predicated region fallthrough
CT: control target
= control target key end

     0   :  { %s840_s1 = inlined_call_operand.vmem [shape: bf16[256,128], index: 1, kind: input, shape index: {}]   ;;  %s841_s0 = inlined_call_operand.vmem [shape: bf16[128,256], index: 0, kind: input, shape index: {}]   ;;  %s842_s2 = inlined_call_operand.vmem [shape: f32[128,128], index: 2, kind: output, shape index: {}]  }
   0x1   :  { %v577_v0 = vld [vmem:[%s840_s1 + $0x40] sm:$0xff]   ;;  %v579_v2 = vld [vmem:[%s840_s1 + $0x48] sm:$0xff]   ;;  %v581_v4 = vld [vmem:[%s840_s1 + $0x50] sm:$0xff]  }
   0x2   :  { %v578_v1 = vld [vmem:[%s840_s1] sm:$0xff]   ;;  %497 = vmatprep.subr.bf16.mxu0 %v577_v0  ;;  %561 = vmatprep.subr.bf16.mxu1 %v577_v0  ;;  %v580_v3 = vld [vmem:[%s840_s1 + $0x8] sm:$0xff]   ;;  %v582_v5 = vld [vmem:[%s840_s1 + $0x10] sm:$0xff]  }
   0x3   :  { %498 = vmatpush3.bf16.msra.mxu0 %v578_v1  ;;  %569 = vmatpush3.bf16.msra.mxu1 %v578_v1  ;;  %v583_v6 = vld [vmem:[%s840_s1 + $0x58] sm:$0xff]   ;;  %v585_v8 = vld [vmem:[%s840_s1 + $0x60] sm:$0xff]   ;;  %v587_v10 = vld [vmem:[%s840_s1 + $0x68] sm:$0xff]  }
   0x4   :  { %499 = vmatprep.subr.bf16.mxu0 %v579_v2  ;;  %562 = vmatprep.subr.bf16.mxu1 %v579_v2  ;;  %v584_v7 = vld [vmem:[%s840_s1 + $0x18] sm:$0xff]   ;;  %v586_v9 = vld [vmem:[%s840_s1 + $0x20] sm:$0xff]   ;;  %v588_v13 = vld [vmem:[%s840_s1 + $0x28] sm:$0xff]  }
   0x5   :  { %v595_v11 = vld [vmem:[%s841_s0 + $0x4] ss:$8 sps:$4 sm:$0xff]   ;;  %v589_v14 = vld [vmem:[%s840_s1 + $0x70] sm:$0xff]   ;;  %v591_v16 = vld [vmem:[%s840_s1 + $0x78] sm:$0xff]  }
   0x6   :  { %v598_v12 = vld [vmem:[%s841_s0 + $0x44] ss:$8 sps:$4 sm:$0xff]   ;;  %268 = vmatprep.mubr.bf16.mxu0 %v595_v11  ;;  %v590_v15 = vld [vmem:[%s840_s1 + $0x30] sm:$0xff]   ;;  %v592_v17 = vld [vmem:[%s840_s1 + $0x38] sm:$0xff]  }
   0x7   :  { %500 = vmatpush3.bf16.msra.mxu0 %v580_v3  ;;  %570 = vmatpush3.bf16.msra.mxu1 %v580_v3  ;;  %v593_v18 = vld [vmem:[%s841_s0] ss:$8 sps:$4 sm:$0xff]   ;;  %v599_v20 = vld [vmem:[%s841_s0 + $0x14] ss:$8 sps:$4 sm:$0xff]   ;;  %v603_v22 = vld [vmem:[%s841_s0 + $0x10] ss:$8 sps:$4 sm:$0xff]  }
   0x8   :  { %501 = vmatprep.subr.bf16.mxu0 %v581_v4  ;;  %563 = vmatprep.subr.bf16.mxu1 %v581_v4  ;;  %v596_v19 = vld [vmem:[%s841_s0 + $0x40] ss:$8 sps:$4 sm:$0xff]   ;;  %v601_v21 = vld [vmem:[%s841_s0 + $0x54] ss:$8 sps:$4 sm:$0xff]   ;;  %v604_v23 = vld [vmem:[%s841_s0 + $0x50] ss:$8 sps:$4 sm:$0xff]  }
   0x9   :  { %300 = vmatprep.mubr.bf16.mxu1 %v598_v12  ;;  %v605_v24 = vld [vmem:[%s841_s0 + $0x24] ss:$8 sps:$4 sm:$0xff]   ;;  %v609_v26 = vld [vmem:[%s841_s0 + $0x20] ss:$8 sps:$4 sm:$0xff]   ;;  %v611_v28 = vld [vmem:[%s841_s0 + $0x34] ss:$8 sps:$4 sm:$0xff]  }
   0xa   :  { %v607_v25 = vld [vmem:[%s841_s0 + $0x64] ss:$8 sps:$4 sm:$0xff]   ;;  %v610_v27 = vld [vmem:[%s841_s0 + $0x60] ss:$8 sps:$4 sm:$0xff]   ;;  %v613_v29 = vld [vmem:[%s841_s0 + $0x74] ss:$8 sps:$4 sm:$0xff]  }
   0xb   :  { %502 = vmatpush3.bf16.msra.mxu0 %v582_v5  ;;  %571 = vmatpush3.bf16.msra.mxu1 %v582_v5  ;;  %v615_v30 = vld [vmem:[%s841_s0 + $0x30] ss:$8 sps:$4 sm:$0xff]  }
   0xc   :  { %503 = vmatprep.subr.bf16.mxu0 %v583_v6  ;;  %564 = vmatprep.subr.bf16.mxu1 %v583_v6  ;;  %v616_v31 = vld [vmem:[%s841_s0 + $0x70] ss:$8 sps:$4 sm:$0xff]  }
   0xf   :  { %504 = vmatpush3.bf16.msra.mxu0 %v584_v7  ;;  %572 = vmatpush3.bf16.msra.mxu1 %v584_v7 }
  0x10   :  { %505 = vmatprep.subr.bf16.mxu0 %v585_v8  ;;  %565 = vmatprep.subr.bf16.mxu1 %v585_v8 }
  0x13   :  { %506 = vmatpush3.bf16.msra.mxu0 %v586_v9  ;;  %573 = vmatpush3.bf16.msra.mxu1 %v586_v9 }
  0x14   :  { %507 = vmatprep.subr.bf16.mxu0 %v587_v10  ;;  %566 = vmatprep.subr.bf16.mxu1 %v587_v10 }
  0x17   :  { %508 = vmatpush3.bf16.msra.mxu0 %v588_v13  ;;  %574 = vmatpush3.bf16.msra.mxu1 %v588_v13 }
  0x18   :  { %509 = vmatprep.subr.bf16.mxu0 %v589_v14  ;;  %567 = vmatprep.subr.bf16.mxu1 %v589_v14 }
  0x1b   :  { %510 = vmatpush3.bf16.msra.mxu0 %v590_v15  ;;  %575 = vmatpush3.bf16.msra.mxu1 %v590_v15 }
  0x1c   :  { %511 = vmatprep.subr.bf16.mxu0 %v591_v16  ;;  %568 = vmatprep.subr.bf16.mxu1 %v591_v16 }
  0x1f   :  { %512 = vmatpush3.bf16.msra.mxu0 %v592_v17  ;;  %576 = vmatpush3.bf16.msra.mxu1 %v592_v17 }
  0x22   :  { %269 = vmatmul.mubr.bf16.vlgmr.msra.gmra.mrb[0].mxu0 %v593_v18  ;;  %301 = vmatmul.mubr.bf16.vlgmr.msra.gmra.mrb[0].mxu1 %v596_v19 }
  0x23   :  { %276 = vmatprep.mubr.bf16.mxu0 %v599_v20  ;;  %308 = vmatprep.mubr.bf16.mxu1 %v601_v21 }
  0x2a   :  { %277 = vmatmul.mubr.bf16.gmra.mrb[4].mxu0 %v603_v22  ;;  %309 = vmatmul.mubr.bf16.gmra.mrb[4].mxu1 %v604_v23 }
  0x2b   :  { %284 = vmatprep.mubr.bf16.mxu0 %v605_v24  ;;  %316 = vmatprep.mubr.bf16.mxu1 %v607_v25 }
  0x32   :  { %285 = vmatmul.mubr.bf16.gmra.mrb[8].mxu0 %v609_v26  ;;  %317 = vmatmul.mubr.bf16.gmra.mrb[8].mxu1 %v610_v27 }
  0x33   :  { %292 = vmatprep.mubr.bf16.mxu0 %v611_v28  ;;  %324 = vmatprep.mubr.bf16.mxu1 %v613_v29 }
  0x3a   :  { %293 = vmatmul.mubr.bf16.gmra.mrb[12].mxu0 %v615_v30  ;;  %325 = vmatmul.mubr.bf16.gmra.mrb[12].mxu1 %v616_v31 }
  0xf5   :  { %v513_v32 = vpop.f32.mrb[0].mxu0  ;;  %v537_v33 = vpop.f32.mrb[0].mxu1 }
  0xf6   :  { %v514_v34 = vpop.f32.mrb[1].mxu0  ;;  %v538_v35 = vpop.f32.mrb[1].mxu1 }
  0xf7   :  { %v515_v36 = vadd.f32 %v514_v34, %v513_v32  ;;  %v539_v37 = vadd.f32 %v538_v35, %v537_v33  ;;  %v516_v38 = vpop.f32.mrb[2].mxu0  ;;  %v540_v39 = vpop.f32.mrb[2].mxu1 }
  0xf8   :  { %v517_v40 = vpop.f32.mrb[3].mxu0  ;;  %v541_v41 = vpop.f32.mrb[3].mxu1 }
  0xf9   :  { %v481_v42 = vmul.f32 -1.442695, %v515_v36  ;;  %v489_v43 = vmul.f32 -1.442695, %v539_v37  ;;  %v518_v44 = vadd.f32 %v517_v40, %v516_v38  ;;  %v542_v45 = vadd.f32 %v541_v41, %v540_v39 }
  0xfb   :  { %617 = vpow2.f32 %v481_v42  ;;  %v482_v46 = vmul.f32 -1.442695, %v518_v44  ;;  %v490_v47 = vmul.f32 -1.442695, %v542_v45 }
  0xfc   :  { %619 = vpow2.f32 %v489_v43 }
  0xfd   :  { %621 = vpow2.f32 %v482_v46  ;;  %v519_v48 = vpop.f32.mrb[4].mxu0  ;;  %v543_v49 = vpop.f32.mrb[4].mxu1 }
  0xfe   :  { %623 = vpow2.f32 %v490_v47  ;;  %v520_v50 = vpop.f32.mrb[5].mxu0  ;;  %v544_v51 = vpop.f32.mrb[5].mxu1 }
  0xff   :  { %v521_v52 = vadd.f32 %v520_v50, %v519_v48  ;;  %v545_v53 = vadd.f32 %v544_v51, %v543_v49  ;;  %v522_v54 = vpop.f32.mrb[6].mxu0  ;;  %v546_v55 = vpop.f32.mrb[6].mxu1 }
 0x100   :  { %v523_v56 = vpop.f32.mrb[7].mxu0  ;;  %v547_v57 = vpop.f32.mrb[7].mxu1 }
 0x101   :  { %v483_v58 = vmul.f32 -1.442695, %v521_v52  ;;  %v491_v59 = vmul.f32 -1.442695, %v545_v53  ;;  %v524_v60 = vadd.f32 %v523_v56, %v522_v54  ;;  %v548_v61 = vadd.f32 %v547_v57, %v546_v55 }
 0x103   :  { %625 = vpow2.f32 %v483_v58  ;;  %v484_v62 = vmul.f32 -1.442695, %v524_v60  ;;  %v492_v63 = vmul.f32 -1.442695, %v548_v61 }
 0x104   :  { %627 = vpow2.f32 %v491_v59 }
 0x105   :  { %v618_v0 = vpop.eup %617  ;;  %629 = vpow2.f32 %v484_v62  ;;  %v525_v1 = vpop.f32.mrb[8].mxu0 }
 0x106   :  { %v549_v2 = vpop.f32.mrb[8].mxu1  ;;  %v620_v3 = vpop.eup %619  ;;  %v381_v4 = vadd.f32 1.0, %v618_v0  ;;  %631 = vpow2.f32 %v492_v63 }
 0x107   :  { %v526_v5 = vpop.f32.mrb[9].mxu0  ;;  %v550_v6 = vpop.f32.mrb[9].mxu1  ;;  %v389_v8 = vadd.f32 1.0, %v620_v3 }
 0x108   :  { %v622_v7 = vpop.eup %621  ;;  %v527_v9 = vadd.f32 %v526_v5, %v525_v1  ;;  %v551_v10 = vadd.f32 %v550_v6, %v549_v2  ;;  %v528_v11 = vpop.f32.mrb[10].mxu0  ;;  %633 = vrcp.f32 %v381_v4 }
 0x109   :  { %v552_v12 = vpop.f32.mrb[10].mxu1  ;;  %v624_v13 = vpop.eup %623  ;;  %v382_v14 = vadd.f32 1.0, %v622_v7  ;;  %635 = vrcp.f32 %v389_v8 }
 0x10a   :  { %v529_v15 = vpop.f32.mrb[11].mxu0  ;;  %v553_v16 = vpop.f32.mrb[11].mxu1  ;;  %v390_v17 = vadd.f32 1.0, %v624_v13  ;;  %v485_v18 = vmul.f32 -1.442695, %v527_v9 }
 0x10b   :  { %v493_v19 = vmul.f32 -1.442695, %v551_v10  ;;  %637 = vrcp.f32 %v382_v14  ;;  %v530_v20 = vadd.f32 %v529_v15, %v528_v11  ;;  %v554_v21 = vadd.f32 %v553_v16, %v552_v12 }
 0x10c   :  { %639 = vrcp.f32 %v390_v17 }
 0x10d   :  { %641 = vpow2.f32 %v485_v18  ;;  %v486_v22 = vmul.f32 -1.442695, %v530_v20  ;;  %v494_v23 = vmul.f32 -1.442695, %v554_v21  ;;  %v626_v24 = vpop.eup %625  ;;  %v531_v25 = vpop.f32.mrb[12].mxu0 }
 0x10e   :  { %643 = vpow2.f32 %v493_v19  ;;  %v555_v26 = vpop.f32.mrb[12].mxu1  ;;  %v628_v27 = vpop.eup %627  ;;  %v383_v28 = vadd.f32 1.0, %v626_v24 }
 0x10f   :  { %645 = vpow2.f32 %v486_v22  ;;  %v532_v29 = vpop.f32.mrb[13].mxu0  ;;  %v556_v30 = vpop.f32.mrb[13].mxu1  ;;  %v391_v32 = vadd.f32 1.0, %v628_v27 }
 0x110   :  { %v630_v31 = vpop.eup %629  ;;  %647 = vpow2.f32 %v494_v23  ;;  %v533_v33 = vadd.f32 %v532_v29, %v531_v25  ;;  %v557_v34 = vadd.f32 %v556_v30, %v555_v26  ;;  %v534_v35 = vpop.f32.mrb[14].mxu0 }
 0x111   :  { %v558_v36 = vpop.f32.mrb[14].mxu1  ;;  %v632_v37 = vpop.eup %631  ;;  %649 = vrcp.f32 %v383_v28  ;;  %v384_v38 = vadd.f32 1.0, %v630_v31 }
 0x112   :  { %v535_v39 = vpop.f32.mrb[15].mxu0  ;;  %v559_v40 = vpop.f32.mrb[15].mxu1  ;;  %651 = vrcp.f32 %v391_v32  ;;  %v392_v41 = vadd.f32 1.0, %v632_v37  ;;  %v487_v42 = vmul.f32 -1.442695, %v533_v33 }
 0x113   :  { %v495_v43 = vmul.f32 -1.442695, %v557_v34  ;;  %v634_v44 = vpop.eup %633  ;;  %653 = vrcp.f32 %v384_v38  ;;  %v536_v45 = vadd.f32 %v535_v39, %v534_v35  ;;  %v560_v46 = vadd.f32 %v559_v40, %v558_v36 }
 0x114   :  { %v636_v47 = vpop.eup %635  ;;  %429 = vst [vmem:[%s842_s2] sm:$0xff] %v634_v44  ;;  %655 = vrcp.f32 %v392_v41 }
 0x115   :  { %v638_v48 = vpop.eup %637  ;;  %437 = vst [vmem:[%s842_s2 + $0x40] sm:$0xff] %v636_v47  ;;  %657 = vpow2.f32 %v487_v42  ;;  %v488_v49 = vmul.f32 -1.442695, %v536_v45  ;;  %v496_v50 = vmul.f32 -1.442695, %v560_v46 }
 0x116   :  { %v640_v51 = vpop.eup %639  ;;  %430 = vst [vmem:[%s842_s2 + $0x8] sm:$0xff] %v638_v48  ;;  %659 = vpow2.f32 %v495_v43 }
 0x117   :  { %v642_v52 = vpop.eup %641  ;;  %438 = vst [vmem:[%s842_s2 + $0x48] sm:$0xff] %v640_v51  ;;  %661 = vpow2.f32 %v488_v49 }
 0x118   :  { %v644_v53 = vpop.eup %643  ;;  %v385_v54 = vadd.f32 1.0, %v642_v52  ;;  %663 = vpow2.f32 %v496_v50 }
 0x119   :  { %v646_v55 = vpop.eup %645  ;;  %v393_v56 = vadd.f32 1.0, %v644_v53 }
 0x11a   :  { %v648_v57 = vpop.eup %647  ;;  %665 = vrcp.f32 %v385_v54  ;;  %v386_v58 = vadd.f32 1.0, %v646_v55 }
 0x11b   :  { %v650_v59 = vpop.eup %649  ;;  %667 = vrcp.f32 %v393_v56  ;;  %v394_v60 = vadd.f32 1.0, %v648_v57 }
 0x11c   :  { %v652_v61 = vpop.eup %651  ;;  %431 = vst [vmem:[%s842_s2 + $0x10] sm:$0xff] %v650_v59  ;;  %669 = vrcp.f32 %v386_v58 }
 0x11d   :  { %v654_v62 = vpop.eup %653  ;;  %439 = vst [vmem:[%s842_s2 + $0x50] sm:$0xff] %v652_v61  ;;  %671 = vrcp.f32 %v394_v60 }
 0x11e   :  { %v656_v63 = vpop.eup %655  ;;  %432 = vst [vmem:[%s842_s2 + $0x18] sm:$0xff] %v654_v62 }
 0x11f   :  { %v658_v0 = vpop.eup %657  ;;  %440 = vst [vmem:[%s842_s2 + $0x58] sm:$0xff] %v656_v63 }
 0x120   :  { %v660_v1 = vpop.eup %659  ;;  %v387_v2 = vadd.f32 1.0, %v658_v0 }
 0x121   :  { %v662_v3 = vpop.eup %661  ;;  %v395_v4 = vadd.f32 1.0, %v660_v1 }
 0x122   :  { %v664_v5 = vpop.eup %663  ;;  %673 = vrcp.f32 %v387_v2  ;;  %v388_v6 = vadd.f32 1.0, %v662_v3 }
 0x123   :  { %675 = vrcp.f32 %v395_v4  ;;  %v396_v7 = vadd.f32 1.0, %v664_v5 }
 0x124   :  { %v666_v8 = vpop.eup %665  ;;  %677 = vrcp.f32 %v388_v6 }
 0x125   :  { %v668_v9 = vpop.eup %667  ;;  %433 = vst [vmem:[%s842_s2 + $0x20] sm:$0xff] %v666_v8  ;;  %679 = vrcp.f32 %v396_v7 }
 0x126   :  { %v670_v10 = vpop.eup %669  ;;  %441 = vst [vmem:[%s842_s2 + $0x60] sm:$0xff] %v668_v9 }
 0x127   :  { %v672_v11 = vpop.eup %671  ;;  %434 = vst [vmem:[%s842_s2 + $0x28] sm:$0xff] %v670_v10 }
 0x128   :  { %442 = vst [vmem:[%s842_s2 + $0x68] sm:$0xff] %v672_v11 }
 0x12c   :  { %v674_v12 = vpop.eup %673 }
 0x12d   :  { %v676_v13 = vpop.eup %675  ;;  %435 = vst [vmem:[%s842_s2 + $0x30] sm:$0xff] %v674_v12 }
 0x12e   :  { %v678_v14 = vpop.eup %677  ;;  %443 = vst [vmem:[%s842_s2 + $0x70] sm:$0xff] %v676_v13 }
 0x12f   :  { %v680_v15 = vpop.eup %679  ;;  %436 = vst [vmem:[%s842_s2 + $0x38] sm:$0xff] %v678_v14 }
 0x130   :  { %444 = vst [vmem:[%s842_s2 + $0x78] sm:$0xff] %v680_v15 }

</bundles_post_ra>
